<compile_context>
chip_gen: v6e
topology: v6e:2x2x1
jax: 0.10.0
libtpu: 0.0.40
codegen_flags: <defaults>
</compile_context>

<pallas_src>
import jax
import jax.numpy as jnp
import numpy as np
from jax.experimental import pallas as pl
from jax.experimental.pallas import tpu as pltpu

# ---------------- module hyperparameters (small, consistent with the module) --
B = 2
C = 64
H = 16
W = 16
HW = H * W
REDUCTION = 16
HID = C // REDUCTION      # 4


def channel_attention_kernel(x_ref, w_ref, out_ref):
    x = x_ref[0]                                    # (C, HW)

    # global max / avg pool over the spatial (lane) axis
    maxv = jnp.max(x, axis=-1, keepdims=True)       # (C, 1)
    avgv = jnp.mean(x, axis=-1, keepdims=True)      # (C, 1)

    # packed weights: [:, :HID] == conv1.weight.T, [:, HID:] == conv2.weight
    w1t = w_ref[:, :HID]                            # (C, HID)
    w2 = w_ref[:, HID:]                             # (C, HID)

    def se(p):                                      # p: (C, 1)
        # conv1 (1x1, no bias): h[j] = sum_c W1[j, c] * p[c]   -> (1, HID)
        h = jnp.sum(w1t * p, axis=0, keepdims=True)
        h = jnp.maximum(h, 0.0)                     # ReLU
        # conv2 (1x1, no bias): o[c] = sum_j W2[c, j] * h[j]   -> (C, 1)
        return jnp.sum(w2 * h, axis=1, keepdims=True)

    z = se(maxv) + se(avgv)                         # (C, 1)
    gate = pl.reciprocal(1.0 + jnp.exp(-z), approx=False)   # exact sigmoid
    out_ref[0] = x * gate                           # broadcast over HW lanes


def make_channel_attention_fn(w1, w2):
    # w1: (HID, C)  == conv1.weight.squeeze();  w2: (C, HID) == conv2.weight.squeeze()
    # Pack both into one pre-transposed (C, 2*HID) slab -> single tiny DMA.
    w_packed = jnp.concatenate([w1.T, w2], axis=1)           # (C, 2*HID)

    kernel = pl.pallas_call(
        channel_attention_kernel,
        out_shape=jax.ShapeDtypeStruct((B, C, HW), jnp.float32),
        grid_spec=pltpu.PrefetchScalarGridSpec(
            num_scalar_prefetch=0,
            grid=(B,),
            in_specs=[
                pl.BlockSpec((1, C, HW), lambda b: (b, 0, 0)),   # one batch slab
                pl.BlockSpec((C, 2 * HID), lambda b: (0, 0)),    # packed weights
            ],
            out_specs=pl.BlockSpec((1, C, HW), lambda b: (b, 0, 0)),
        ),
        compiler_params=pltpu.CompilerParams(
            dimension_semantics=("parallel",)),   # 2 TCs on v7x; harmless on v5e/v6e
    )

    def fn(x):                                    # x: (B, C, H, W)
        out = kernel(x.reshape(B, C, HW), w_packed)
        return out.reshape(B, C, H, W)
    return fn


def reference_channel_attention(x, w1, w2):
    # pure-JAX reference matching the PyTorch module
    maxp = jnp.max(x, axis=(2, 3))                                   # (B, C)
    avgp = jnp.mean(x, axis=(2, 3))                                  # (B, C)

    def se(p):
        h = jnp.maximum(
            jnp.dot(p, w1.T, precision=jax.lax.Precision.HIGHEST), 0.0)
        return jnp.dot(h, w2.T, precision=jax.lax.Precision.HIGHEST)

    gate = jax.nn.sigmoid(se(maxp) + se(avgp))                       # (B, C)
    return x * gate[:, :, None, None]


if __name__ == "__main__":
    key = jax.random.PRNGKey(0)
    kx, k1, k2 = jax.random.split(key, 3)

    x = jax.random.normal(kx, (B, C, H, W), dtype=jnp.float32)
    w1 = 0.1 * jax.random.normal(k1, (HID, C), jnp.float32)   # conv1.weight (squeezed)
    w2 = 0.1 * jax.random.normal(k2, (C, HID), jnp.float32)   # conv2.weight (squeezed)

    fn = make_channel_attention_fn(w1, w2)
    out = jax.block_until_ready(fn(x))

    ref = jax.block_until_ready(reference_channel_attention(x, w1, w2))
    np.testing.assert_allclose(np.asarray(out), np.asarray(ref), atol=1e-4, rtol=1e-4)

    print("KERNEL_OK")
</pallas_src>

<mosaic_0001>
module attributes {stable_mosaic.version = 11 : i64} {
  func.func @channel_attention_kernel(%arg0: i32, %arg1: memref<1x64x256xf32, #tpu.memory_space<vmem>>, %arg2: memref<64x8xf32, #tpu.memory_space<vmem>>, %arg3: memref<1x64x256xf32, #tpu.memory_space<vmem>>) attributes {dimension_semantics = [#tpu.dimension_semantics<parallel>], iteration_bounds = array<i64: 2>, scalar_prefetch = 0 : i64, scratch_operands = 0 : i64, tpu.core_type = #tpu.core_type<tc>, window_params = [{transform_indices = @transform_0, window_bounds = array<i64: 1, 64, 256>}, {pipeline_mode = #tpu.pipeline_mode<synchronous>, transform_indices = @transform_1, window_bounds = array<i64: 64, 8>}, {transform_indices = @transform_2, window_bounds = array<i64: 1, 64, 256>}]} {
    %c0 = arith.constant 0 : index
    %c0_0 = arith.constant 0 : index
    %c0_1 = arith.constant 0 : index
    %0 = vector.load %arg1[%c0, %c0_0, %c0_1] : memref<1x64x256xf32, #tpu.memory_space<vmem>>, vector<1x64x256xf32>
    %1 = vector.shape_cast %0 : vector<1x64x256xf32> to vector<64x256xf32>
    %cst = arith.constant dense<0xFF800000> : vector<64xf32>
    %2 = vector.multi_reduction <maximumf>, %1, %cst [1] : vector<64x256xf32> to vector<64xf32>
    %3 = vector.shape_cast %2 : vector<64xf32> to vector<64x1xf32>
    %cst_2 = arith.constant dense<0.000000e+00> : vector<64xf32>
    %4 = vector.multi_reduction <add>, %1, %cst_2 [1] : vector<64x256xf32> to vector<64xf32>
    %5 = vector.shape_cast %4 : vector<64xf32> to vector<64x1xf32>
    %cst_3 = arith.constant 2.560000e+02 : f32
    %6 = vector.broadcast %cst_3 : f32 to vector<64x1xf32>
    %7 = arith.divf %5, %6 : vector<64x1xf32>
    %c0_4 = arith.constant 0 : index
    %c0_5 = arith.constant 0 : index
    %8 = vector.load %arg2[%c0_4, %c0_5] : memref<64x8xf32, #tpu.memory_space<vmem>>, vector<64x4xf32>
    %c0_6 = arith.constant 0 : index
    %c4 = arith.constant 4 : index
    %9 = vector.load %arg2[%c0_6, %c4] : memref<64x8xf32, #tpu.memory_space<vmem>>, vector<64x4xf32>
    %10 = vector.broadcast %3 : vector<64x1xf32> to vector<64x4xf32>
    %11 = arith.mulf %8, %10 : vector<64x4xf32>
    %cst_7 = arith.constant dense<0.000000e+00> : vector<4xf32>
    %12 = vector.multi_reduction <add>, %11, %cst_7 [0] : vector<64x4xf32> to vector<4xf32>
    %13 = vector.shape_cast %12 : vector<4xf32> to vector<1x4xf32>
    %cst_8 = arith.constant 0.000000e+00 : f32
    %14 = vector.broadcast %cst_8 : f32 to vector<1x4xf32>
    %15 = arith.maximumf %13, %14 : vector<1x4xf32>
    %16 = vector.broadcast %15 : vector<1x4xf32> to vector<64x4xf32>
    %17 = arith.mulf %9, %16 : vector<64x4xf32>
    %cst_9 = arith.constant dense<0.000000e+00> : vector<64xf32>
    %18 = vector.multi_reduction <add>, %17, %cst_9 [1] : vector<64x4xf32> to vector<64xf32>
    %19 = vector.shape_cast %18 : vector<64xf32> to vector<64x1xf32>
    %20 = vector.broadcast %7 : vector<64x1xf32> to vector<64x4xf32>
    %21 = arith.mulf %8, %20 : vector<64x4xf32>
    %cst_10 = arith.constant dense<0.000000e+00> : vector<4xf32>
    %22 = vector.multi_reduction <add>, %21, %cst_10 [0] : vector<64x4xf32> to vector<4xf32>
    %23 = vector.shape_cast %22 : vector<4xf32> to vector<1x4xf32>
    %cst_11 = arith.constant 0.000000e+00 : f32
    %24 = vector.broadcast %cst_11 : f32 to vector<1x4xf32>
    %25 = arith.maximumf %23, %24 : vector<1x4xf32>
    %26 = vector.broadcast %25 : vector<1x4xf32> to vector<64x4xf32>
    %27 = arith.mulf %9, %26 : vector<64x4xf32>
    %cst_12 = arith.constant dense<0.000000e+00> : vector<64xf32>
    %28 = vector.multi_reduction <add>, %27, %cst_12 [1] : vector<64x4xf32> to vector<64xf32>
    %29 = vector.shape_cast %28 : vector<64xf32> to vector<64x1xf32>
    %30 = arith.addf %19, %29 : vector<64x1xf32>
    %cst_13 = arith.constant 0.000000e+00 : f32
    %31 = vector.broadcast %cst_13 : f32 to vector<64x1xf32>
    %32 = arith.subf %31, %30 : vector<64x1xf32>
    %33 = math.exp %32 : vector<64x1xf32>
    %cst_14 = arith.constant 1.000000e+00 : f32
    %34 = vector.broadcast %cst_14 : f32 to vector<64x1xf32>
    %35 = arith.addf %34, %33 : vector<64x1xf32>
    %36 = tpu.reciprocal %35 : vector<64x1xf32> -> vector<64x1xf32>
    %37 = vector.broadcast %36 : vector<64x1xf32> to vector<64x256xf32>
    %38 = arith.mulf %1, %37 : vector<64x256xf32>
    %c0_15 = arith.constant 0 : index
    %c0_16 = arith.constant 0 : index
    %c0_17 = arith.constant 0 : index
    %39 = vector.load %arg3[%c0_15, %c0_16, %c0_17] : memref<1x64x256xf32, #tpu.memory_space<vmem>>, vector<1x64x256xf32>
    %40 = vector.shape_cast %39 : vector<1x64x256xf32> to vector<64x256xf32>
    %41 = vector.shape_cast %38 : vector<64x256xf32> to vector<1x64x256xf32>
    tpu.vector_store %arg3[%c0_15, %c0_16, %c0_17], %41 {strides = array<i32>} : memref<1x64x256xf32, #tpu.memory_space<vmem>>, vector<1x64x256xf32>,
    return
  }
  func.func @transform_0(%arg0: i32) -> (i32, i32, i32) {
    %c0_i32 = arith.constant 0 : i32
    %c0_i32_0 = arith.constant 0 : i32
    %c0_i32_1 = arith.constant 0 : i32
    return %arg0, %c0_i32, %c0_i32_0 : i32, i32, i32
  }
  func.func @transform_1(%arg0: i32) -> (i32, i32) {
    %c0_i32 = arith.constant 0 : i32
    %c0_i32_0 = arith.constant 0 : i32
    %c0_i32_1 = arith.constant 0 : i32
    return %c0_i32, %c0_i32_0 : i32, i32
  }
  func.func @transform_2(%arg0: i32) -> (i32, i32, i32) {
    %c0_i32 = arith.constant 0 : i32
    %c0_i32_0 = arith.constant 0 : i32
    %c0_i32_1 = arith.constant 0 : i32
    return %arg0, %c0_i32, %c0_i32_0 : i32, i32, i32
  }
}

</mosaic_0001>

<bundles_post_ra>
// kernel: tpu_custom_call.1
= control target key start
LH: loop header
LB: loop body
LE: loop exit
PB: predicated region body
PF: predicated region fallthrough
CT: control target
= control target key end

     0   :  { %7 = vsyncpa [#allocation3], 0  ;;  %s1219_s0 = inlined_call_operand.hbm [shape: f32[2,64,256], index: 0, kind: input, shape index: {}]   ;;  %s1220_s1 = inlined_call_operand.vmem [shape: f32[64,8], index: 1, kind: input, shape index: {}]   ;;  %s1221_s2 = inlined_call_operand.hbm [shape: f32[2,64,256], index: 2, kind: output, shape index: {}]  }
   0x1   :  { %9 = vsyncpa [#allocation3 + $0x1], 0 }
   0x2   :  { %10 = vsyncpa [#allocation4], 0 }
   0x3   :  { %12 = vsyncpa [#allocation4 + $0x1], 0  ;;  %s824_s9 = smov 0   ;;  %s826_s10 = smov 0  }
   0x4   :  { %s828_s11 = smov 0   ;;  %s830_s12 = smov 0  }
   0x5 LB: > { %s845_s13 = sadd.s32 4294967295, %s799_s12   ;;  %s607_s14 = sadd.s32 4294967294, %s799_s12   ;;  %s799_s12 = sphi %s830_s12, %s1236_s12   ;;  %s795_s11 = sphi %s828_s11, %s1235_s11   ;;  %s791_s10 = sphi %s826_s10, %s1234_s10   ;;  %s787_s9 = sphi %s824_s9, %s1233_s9  }
   0x6   : > { %s849_s15 = sadd.s32 1, %s799_s12   ;;  %s25_s16 = sadd.s32 1, %s795_s11 }
   0x7   : > { %s22_s17 = ssub.s32 %s799_s12, %s849_s15  ;;  %p32_p0 = scmp.ne.s32.totalorder %s795_s11, %s791_s10 }
   0x8   : > { %p23_p1 = scmp.eq.s32.totalorder %s22_s17, 0  ;;  %p33_p2 = scmp.eq.s32.totalorder %s799_s12, 0 }
   0x9   : > { %p38_p3 = scmp.ne.s32.totalorder %s791_s10, %s787_s9  ;;  %p39_p4 = scmp.eq.s32.totalorder %s845_s13, 0 }
   0xa   : > { %s861_s18 = scalar_select %p23_p1, %s795_s11, %s25_s16  }
   0xb   : > { %p863_p5 = por %p33_p2, %p32_p0  ;;  %p867_p6 = por %p39_p4, %p38_p3 }
   0xc   : > { %p83_p7 = scmp.eq.s32.totalorder %s845_s13, 1  ;;  %p89_p8 = scmp.eq.s32.totalorder %s607_s14, 1 }
   0xd   : > { %s1225_s20 = scalar_select %p867_p6, 1, 0 }
   0xe   : > { %p635_p10 = scmp.lt.s32.totalorder %s799_s12, 2  ;;  %p874_p11 = por %p83_p7, %p32_p0 }
   0xf   : > { %p878_p12 = por %p89_p8, %p38_p3  ;;  %s112_s23 = sand.u32 1, %s795_s11  }
  0x10   : > { %s1226_s21 = scalar_select %p874_p11, 1, 0 }
  0x11   : > { %s1227_s22 = scalar_select %p878_p12, 1, 0 }
  0x12   : > { %s621_s24 = sshll.u32 %s799_s12, 11  ;;  %s610_s25 = sshll.u32 %s112_s23, 7 }
  0x13   : > { %s887_s28 = scalar_lea.hbm %s1219_s0, %s621_s24  ;;  %s116_s29 = scalar_lea.vmem [#allocation2], %s610_s25 }
  0x14   : > { %s123_s30 = sshll.u32 %s116_s29, 4  ;;  %p891_p13 = pnand %p635_p10, %p863_p5  ;;  %s895_s30 = int_to_ptr.vmem [resolvable:$true] %s123_s30 }
  0x15   : > { %s897_s4 = scalar_lea.sflag [#allocation3], %s112_s23  ;;  %s707_s5 = scalar_lea.hbm %s887_s28, 2048 }
  0x16   : > { %p708_p0 = scmp.ne.s32.totalorder %s887_s28, %s707_s5  ;;  %p709_p1 = pneg %p891_p13 }
  0x17   : > { %s712_s8 = scalar_lea.hbm %s1219_s0, 4096  ;;  %p713_p4 = scmp.lt.s32.totalorder %s887_s28, %s1219_s0 }
  0x18   : > { %p710_p2 = pnand %p709_p1, %p708_p0  ;;  %p714_p5 = scmp.lt.s32.totalorder %s712_s8, %s707_s5 }
  0x1a   : > { %p711_p3 = pneg %p710_p2  ;;  %p715_p7 = por %p714_p5, %p713_p4 }
  0x1c   : > { %p716_p8 = pnand %p715_p7, %p711_p3 }
  0x1e   : > { %719 = shalt.err (!%p716_p8)
}
  0x1f   : > { %s720_s17 = scalar_lea.vmem %s895_s30, 2048  ;;  %s801_s19 = smov [#allocation2]  }
  0x20   : > { %p721_p10 = scmp.ne.s32.totalorder %s895_s30, %s720_s17  ;;  %s725_s23 = sshll.u32 %s801_s19, 4  ;;  %s726_s23 = int_to_ptr.vmem [resolvable:$false] %s725_s23 }
  0x21   : > { %s727_s24 = scalar_lea.vmem %s726_s23, 4096  ;;  %p728_p2 = scmp.lt.s32.totalorder %s895_s30, %s726_s23 }
  0x22   : > { %p723_p9 = pnand %p721_p10, %p709_p1  ;;  %p729_p12 = scmp.lt.s32.totalorder %s727_s24, %s720_s17 }
  0x24   : > { %p724_p0 = pneg %p723_p9  ;;  %p730_p11 = por %p729_p12, %p728_p2 }
  0x26   : > { %p731_p6 = pnand %p730_p11, %p724_p0 }
  0x28   : > { %734 = shalt.err (!%p731_p6)
}
  0x29   : > { %s802_s25 = smov 256   ;;  %s803_s26 = smov 16  }
  0x2a   : > { %630 = dma.hbm_to_vmem [thread:$0]  (!%p891_p13), %s887_s28, 2048, %s895_s30, %s897_s4, %s802_s25, %s802_s25, %s803_s26  }
  0x2b   : > { %p613_p9 = scmp.ge.s32.totalorder %s799_s12, 1  ;;  %p131_p1 = scmp.lt.s32.totalorder %s799_s12, 3 }
  0x2d   : > { %p132_p3 = pnand %p613_p9, %p131_p1 }
  0x2e   : > { %s921_s27 = sand.u32 (!%p132_p3), 1, %s791_s10   ;;  %p1229_p6 = scmp.ne.s32.totalorder (!%p132_p3), %s1225_s20, 0 }
  0x2f   : > { %135 = sbr.rel (%p132_p3) target bundleno = 697 (0x2b9), region = 28  ;;  %s614_s29 = sshll.u32 (!%p132_p3), %s921_s27, 7 }
  0x30   : > { %s138_s5 = scalar_lea.sflag (!%p132_p3), [#allocation3], %s921_s27  ;;  %s927_s6 = scalar_lea.vmem (!%p132_p3), [#allocation2], %s614_s29 }
  0x34   : > { %778 = dma.done.wait (%p1229_p6), %s138_s5, 2048  }
  0x35   : > { %780 = vsyncadd (%p1229_p6), %s138_s5, 4294965248  ;;  %v934_v0 = vld [vmem:[%s927_s6] sm:$0xff]  ;;  %v937_v1 = vld [vmem:[%s927_s6 + $0x8] sm:$0xff]  ;;  %vm251_vm0 = vcmask 31744   ;;  %s805_s20 = smov 124   ;;  %s1139_s28 = scalar_lea.vmem [#allocation5], %s614_s29 }
  0x36   : > { %v940_v2 = vld [vmem:[%s927_s6 + $0x10] sm:$0xff]  ;;  %v202_v3 = vadd.f32 %v937_v1, %v934_v0  ;;  %v178_v4 = vmax.f32 %v934_v0, %v937_v1  ;;  %v947_v5 = vld [vmem:[%s927_s6 + $0x18] sm:$0xff]  ;;  %v954_v8 = vld [vmem:[%s927_s6 + $0x20] sm:$0xff]  ;;  %s622_s29 = sshll.u32 %s845_s13, 11  ;;  %s534_s30 = sshll.u32 %s1139_s28, 4  ;;  %s1170_s30 = int_to_ptr.vmem [resolvable:$true] %s534_s30 }
  0x37   : > { %v205_v6 = vadd.f32 %v947_v5, %v940_v2  ;;  %v181_v7 = vmax.f32 %v940_v2, %v947_v5  ;;  %v957_v9 = vld [vmem:[%s927_s6 + $0x28] sm:$0xff]  ;;  %v964_v12 = vld [vmem:[%s927_s6 + $0x30] sm:$0xff]  ;;  %v967_v13 = vld [vmem:[%s927_s6 + $0x38] sm:$0xff]  ;;  %s1168_s7 = scalar_lea.hbm %s1221_s2, %s622_s29  ;;  %s521_s13 = scalar_lea.sflag [#allocation4], %s921_s27 }
  0x38   : > { %203 = vadd.xlane.f32.xlu0 %v202_v3  ;;  %179 = vmax.xlane.f32.xlu1 %v178_v4  ;;  %v208_v10 = vadd.f32 %v957_v9, %v954_v8  ;;  %v184_v11 = vmax.f32 %v954_v8, %v957_v9  ;;  %v211_v14 = vadd.f32 %v967_v13, %v964_v12  ;;  %v974_v16 = vld [vmem:[%s927_s6 + $0x40] sm:$0xff]  ;;  %v977_v17 = vld [vmem:[%s927_s6 + $0x48] sm:$0xff]  ;;  %v984_v20 = vld [vmem:[%s927_s6 + $0x50] sm:$0xff]  ;;  %s735_s8 = scalar_lea.vmem %s1170_s30, 2048  ;;  %p1230_p12 = scmp.ne.s32.totalorder %s1226_s21, 0 }
  0x39   : > { %v187_v15 = vmax.f32 %v964_v12, %v967_v13  ;;  %v214_v18 = vadd.f32 %v977_v17, %v974_v16  ;;  %v190_v19 = vmax.f32 %v974_v16, %v977_v17  ;;  %v987_v21 = vld [vmem:[%s927_s6 + $0x58] sm:$0xff]  ;;  %v994_v24 = vld [vmem:[%s927_s6 + $0x60] sm:$0xff]  ;;  %v997_v25 = vld [vmem:[%s927_s6 + $0x68] sm:$0xff]  ;;  %p736_p11 = scmp.ne.s32.totalorder %s1170_s30, %s735_s8  ;;  %s806_s14 = smov [#allocation5]  }
  0x3a   : > { %v217_v22 = vadd.f32 %v987_v21, %v984_v20  ;;  %v193_v23 = vmax.f32 %v984_v20, %v987_v21  ;;  %v220_v26 = vadd.f32 %v997_v25, %v994_v24  ;;  %v196_v27 = vmax.f32 %v994_v24, %v997_v25  ;;  %v1004_v28 = vld [vmem:[%s927_s6 + $0x70] sm:$0xff]  ;;  %v1007_v29 = vld [vmem:[%s927_s6 + $0x78] sm:$0xff]  ;;  %v1016_v35 = vld [vmem:[%s1220_s1] sm:$0xff]  ;;  %s804_s6 = smov 4   ;;  %s739_s16 = sshll.u32 %s806_s14, 4  ;;  %s740_s16 = int_to_ptr.vmem [resolvable:$false] %s739_s16 }
  0x3b   : > { %v223_v30 = vadd.f32 %v1007_v29, %v1004_v28  ;;  %v199_v31 = vmax.f32 %v1004_v28, %v1007_v29  ;;  %v1022_v40 = vld [vmem:[%s1220_s1 + $0x8] sm:$0xff]  ;;  %v1030_v48 = vld [vmem:[%s1220_s1 + $0x10] sm:$0xff]  ;;  %v1038_v56 = vld [vmem:[%s1220_s1 + $0x18] sm:$0xff]  ;;  %p737_p13 = pnand %p736_p11, %p1230_p12  ;;  %s741_s17 = scalar_lea.vmem %s740_s16, 4096 }
  0x3c   : > { %206 = vadd.xlane.f32.xlu0 %v205_v6  ;;  %182 = vmax.xlane.f32.xlu1 %v181_v7  ;;  %v1046_v60 = vld [vmem:[%s1220_s1 + $0x20] sm:$0xff]  ;;  %p742_p5 = scmp.lt.s32.totalorder %s1170_s30, %s740_s16  ;;  %p743_p7 = scmp.lt.s32.totalorder %s741_s17, %s735_s8 }
  0x3d   : > { %p738_p4 = pneg %p737_p13 }
  0x3e   : > { %p744_p8 = por %p743_p7, %p742_p5 }
  0x40   : > { %209 = vadd.xlane.f32.xlu0 %v208_v10  ;;  %185 = vmax.xlane.f32.xlu1 %v184_v11  ;;  %v1054_v10 = vld [vmem:[%s1220_s1 + $0x28] sm:$0xff]  ;;  %p745_p10 = pnand %p744_p8, %p738_p4 }
  0x44   : > { %212 = vadd.xlane.f32.xlu0 %v211_v14  ;;  %188 = vmax.xlane.f32.xlu1 %v187_v15 }
  0x48   : > { %215 = vadd.xlane.f32.xlu0 %v214_v18  ;;  %191 = vmax.xlane.f32.xlu1 %v190_v19 }
  0x4c   : > { %218 = vadd.xlane.f32.xlu0 %v217_v22  ;;  %194 = vmax.xlane.f32.xlu1 %v193_v23 }
  0x50   : > { %221 = vadd.xlane.f32.xlu0 %v220_v26  ;;  %197 = vmax.xlane.f32.xlu1 %v196_v27 }
  0x54   : > { %224 = vadd.xlane.f32.xlu0 %v223_v30  ;;  %200 = vmax.xlane.f32.xlu1 %v199_v31 }
  0xc1   : > { %v204_v32 = vpop.xlane.xlu0 %203  ;;  %v180_v33 = vpop.xlane.xlu1 %179 }
  0xc2   : > { %v227_v34 = vmul.f32 0.00390625, %v204_v32  ;;  %v243_v57 = vmul.f32 %v1016_v35, %v180_v33 }
  0xc4   : > { %v342_v36 = vmul.f32 %v1016_v35, %v227_v34  ;;  %v252_v11 = vsel %vm251_vm0, %v243_v57, 0.0  ;;  %v1066_v34 = vld [vmem:[%s1220_s1 + $0x30] sm:$0xff] }
  0xc5   : > { %v207_v37 = vpop.xlane.xlu0 %206  ;;  %v183_v38 = vpop.xlane.xlu1 %182 }
  0xc6   : > { %v228_v39 = vmul.f32 0.00390625, %v207_v37  ;;  %v350_v41 = vsel %vm251_vm0, %v342_v36, 0.0  ;;  %v244_v52 = vmul.f32 %v1022_v40, %v183_v38 }
  0xc8   : > { %v343_v42 = vmul.f32 %v1022_v40, %v228_v39  ;;  %v253_v63 = vsel %vm251_vm0, %v244_v52, 0.0 }
  0xc9   : > { %v210_v43 = vpop.xlane.xlu0 %209  ;;  %v186_v44 = vpop.xlane.xlu1 %185  ;;  %v254_v19 = vadd.f32 %v253_v63, %v252_v11 }
  0xca   : > { %v351_v45 = vsel %vm251_vm0, %v343_v42, 0.0  ;;  %v229_v46 = vmul.f32 0.00390625, %v210_v43  ;;  %v245_v58 = vmul.f32 %v1030_v48, %v186_v44 }
  0xcb   : > { %v352_v47 = vadd.f32 %v351_v45, %v350_v41 }
  0xcc   : > { %v344_v49 = vmul.f32 %v1030_v48, %v229_v46  ;;  %v255_v14 = vsel %vm251_vm0, %v245_v58, 0.0 }
  0xcd   : > { %v213_v50 = vpop.xlane.xlu0 %212  ;;  %v189_v51 = vpop.xlane.xlu1 %188  ;;  %v256_v32 = vadd.f32 %v255_v14, %v254_v19 }
  0xce   : > { %v353_v53 = vsel %vm251_vm0, %v344_v49, 0.0  ;;  %v230_v54 = vmul.f32 0.00390625, %v213_v50  ;;  %v246_v4 = vmul.f32 %v1038_v56, %v189_v51  ;;  %v1076_v49 = vld [vmem:[%s1220_s1 + $0x38] sm:$0xff] }
  0xcf   : > { %v354_v55 = vadd.f32 %v353_v53, %v352_v47 }
  0xd0   : > { %v345_v59 = vmul.f32 %v1038_v56, %v230_v54  ;;  %v257_v26 = vsel %vm251_vm0, %v246_v4, 0.0 }
  0xd1   : > { %v216_v61 = vpop.xlane.xlu0 %215  ;;  %v192_v62 = vpop.xlane.xlu1 %191  ;;  %v258_v38 = vadd.f32 %v257_v26, %v256_v32 }
  0xd2   : > { %v355_v3 = vsel %vm251_vm0, %v345_v59, 0.0  ;;  %v231_v6 = vmul.f32 0.00390625, %v216_v61  ;;  %v247_v18 = vmul.f32 %v1046_v60, %v192_v62 }
  0xd3   : > { %v356_v7 = vadd.f32 %v355_v3, %v354_v55 }
  0xd4   : > { %v346_v15 = vmul.f32 %v1046_v60, %v231_v6  ;;  %v259_v36 = vsel %vm251_vm0, %v247_v18, 0.0 }
  0xd5   : > { %v219_v22 = vpop.xlane.xlu0 %218  ;;  %v195_v23 = vpop.xlane.xlu1 %194  ;;  %v260_v46 = vadd.f32 %v259_v36, %v258_v38 }
  0xd6   : > { %v357_v27 = vsel %vm251_vm0, %v346_v15, 0.0  ;;  %v232_v30 = vmul.f32 0.00390625, %v219_v22  ;;  %v248_v31 = vmul.f32 %v1054_v10, %v195_v23 }
  0xd7   : > { %v358_v33 = vadd.f32 %v357_v27, %v356_v7 }
  0xd8   : > { %v347_v37 = vmul.f32 %v1054_v10, %v232_v30  ;;  %v261_v43 = vsel %vm251_vm0, %v248_v31, 0.0 }
  0xd9   : > { %v222_v39 = vpop.xlane.xlu0 %221  ;;  %v198_v41 = vpop.xlane.xlu1 %197  ;;  %v262_v52 = vadd.f32 %v261_v43, %v260_v46 }
  0xda   : > { %v359_v42 = vsel %vm251_vm0, %v347_v37, 0.0  ;;  %v233_v44 = vmul.f32 0.00390625, %v222_v39  ;;  %v249_v45 = vmul.f32 %v1066_v34, %v198_v41 }
  0xdb   : > { %v360_v47 = vadd.f32 %v359_v42, %v358_v33 }
  0xdc   : > { %v348_v50 = vmul.f32 %v1066_v34, %v233_v44  ;;  %v263_v51 = vsel %vm251_vm0, %v249_v45, 0.0 }
  0xdd   : > { %v225_v53 = vpop.xlane.xlu0 %224  ;;  %v201_v54 = vpop.xlane.xlu1 %200  ;;  %v264_v61 = vadd.f32 %v263_v51, %v262_v52 }
  0xde   : > { %v361_v55 = vsel %vm251_vm0, %v348_v50, 0.0  ;;  %v234_v57 = vmul.f32 0.00390625, %v225_v53  ;;  %v250_v58 = vmul.f32 %v1076_v49, %v201_v54 }
  0xdf   : > { %v362_v59 = vadd.f32 %v361_v55, %v360_v47 }
  0xe0   : > { %v349_v62 = vmul.f32 %v1076_v49, %v234_v57  ;;  %v265_v63 = vsel %vm251_vm0, %v250_v58, 0.0 }
  0xe1   : > { %v266_v3 = vadd.f32 %v265_v63, %v264_v61 }
  0xe2   : > { %v363_v4 = vsel %vm251_vm0, %v349_v62, 0.0 }
  0xe3   : > { %v364_v6 = vadd.f32 %v363_v4, %v362_v59  ;;  %v267_v7 = vrot.slane %v266_v3, 4 }
  0xe5   : > { %v365_v11 = vrot.slane %v364_v6, 4  ;;  %v268_v14 = vadd.f32 %v267_v7, %v266_v3 }
  0xe7   : > { %v366_v15 = vadd.f32 %v365_v11, %v364_v6  ;;  %v269_v18 = vrot.slane %v268_v14, 2 }
  0xe9   : > { %v270_v19 = vadd.f32 %v269_v18, %v268_v14  ;;  %v367_v22 = vrot.slane %v366_v15, 2 }
  0xeb   : > { %v271_v23 = vrot.slane %v270_v19, 1  ;;  %v368_v26 = vadd.f32 %v367_v22, %v366_v15 }
  0xed   : > { %v272_v27 = vadd.f32 %v271_v23, %v270_v19  ;;  %v369_v30 = vrot.slane %v368_v26, 1 }
  0xef   : > { %v273_v31 = vmax.f32 %v272_v27, 0.0  ;;  %v370_v32 = vadd.f32 %v369_v30, %v368_v26 }
  0xf1   : > { %275 = vrot.lane.b32.xlu0 %v273_v31, %s804_s6  ;;  %v371_v33 = vmax.f32 %v370_v32, 0.0 }
  0xf3   : > { %373 = vrot.lane.b32.xlu1 %v371_v33, %s804_s6 }
 0x163   : > { %v276_v36 = vpop.permute.xlu0 %275 }
 0x164   : > { %v280_v37 = vmul.f32 %v276_v36, %v1030_v48  ;;  %v278_v38 = vmul.f32 %v276_v36, %v1016_v35  ;;  %v282_v39 = vmul.f32 %v276_v36, %v1046_v60  ;;  %v279_v41 = vmul.f32 %v276_v36, %v1022_v40 }
 0x165   : > { %v284_v42 = vmul.f32 %v276_v36, %v1066_v34  ;;  %v281_v43 = vmul.f32 %v276_v36, %v1038_v56  ;;  %v374_v44 = vpop.permute.xlu1 %373  ;;  %v283_v45 = vmul.f32 %v276_v36, %v1054_v10  ;;  %v285_v47 = vmul.f32 %v276_v36, %v1076_v49 }
 0x166   : > { %298 = vrot.lane.b32.xlu0 %v280_v37, %s805_s20  ;;  %294 = vrot.lane.b32.xlu1 %v278_v38, %s805_s20  ;;  %v376_v46 = vmul.f32 %v374_v44, %v1016_v35  ;;  %v378_v50 = vmul.f32 %v374_v44, %v1030_v48  ;;  %v377_v51 = vmul.f32 %v374_v44, %v1022_v40 }
 0x167   : > { %v380_v52 = vmul.f32 %v374_v44, %v1046_v60  ;;  %v379_v35 = vmul.f32 %v374_v44, %v1038_v56  ;;  %v382_v53 = vmul.f32 %v374_v44, %v1066_v34  ;;  %v381_v48 = vmul.f32 %v374_v44, %v1054_v10 }
 0x168   : > { %v383_v40 = vmul.f32 %v374_v44, %v1076_v49 }
 0x16a   : > { %302 = vrot.lane.b32.xlu0 %v282_v39, %s805_s20  ;;  %296 = vrot.lane.b32.xlu1 %v279_v41, %s805_s20 }
 0x16e   : > { %306 = vrot.lane.b32.xlu0 %v284_v42, %s805_s20  ;;  %300 = vrot.lane.b32.xlu1 %v281_v43, %s805_s20 }
 0x172   : > { %304 = vrot.lane.b32.xlu1 %v283_v45, %s805_s20  ;;  %392 = vrot.lane.b32.xlu0 %v376_v46, %s805_s20 }
 0x176   : > { %308 = vrot.lane.b32.xlu1 %v285_v47, %s805_s20  ;;  %396 = vrot.lane.b32.xlu0 %v378_v50, %s805_s20 }
 0x17a   : > { %394 = vrot.lane.b32.xlu1 %v377_v51, %s805_s20  ;;  %400 = vrot.lane.b32.xlu0 %v380_v52, %s805_s20 }
 0x17e   : > { %398 = vrot.lane.b32.xlu1 %v379_v35, %s805_s20  ;;  %404 = vrot.lane.b32.xlu0 %v382_v53, %s805_s20 }
 0x182   : > { %402 = vrot.lane.b32.xlu1 %v381_v48, %s805_s20 }
 0x186   : > { %406 = vrot.lane.b32.xlu1 %v383_v40, %s805_s20 }
 0x1d8   : > { %v299_v60 = vpop.permute.xlu0 %298  ;;  %v295_v54 = vpop.permute.xlu1 %294 }
 0x1d9   : > { %v318_v55 = vsel %vm251_vm0, %v295_v54, 0.0  ;;  %v324_v34 = vsel %vm251_vm0, %v299_v60, 0.0 }
 0x1da   : > { %319 = vadd.xlane.f32.xlu0 %v318_v55 }
 0x1dc   : > { %v303_v56 = vpop.permute.xlu0 %302  ;;  %v297_v57 = vpop.permute.xlu1 %296 }
 0x1dd   : > { %v321_v58 = vsel %vm251_vm0, %v297_v57, 0.0  ;;  %v330_v63 = vsel %vm251_vm0, %v303_v56, 0.0 }
 0x1de   : > { %325 = vadd.xlane.f32.xlu0 %v324_v34  ;;  %322 = vadd.xlane.f32.xlu1 %v321_v58 }
 0x1e0   : > { %v307_v10 = vpop.permute.xlu0 %306  ;;  %v301_v59 = vpop.permute.xlu1 %300 }
 0x1e1   : > { %v327_v61 = vsel %vm251_vm0, %v301_v59, 0.0  ;;  %v336_v6 = vsel %vm251_vm0, %v307_v10, 0.0 }
 0x1e2   : > { %328 = vadd.xlane.f32.xlu0 %v327_v61 }
 0x1e4   : > { %v393_v49 = vpop.permute.xlu0 %392  ;;  %v305_v62 = vpop.permute.xlu1 %304 }
 0x1e5   : > { %v333_v3 = vsel %vm251_vm0, %v305_v62, 0.0  ;;  %v416_v15 = vsel %vm251_vm0, %v393_v49, 0.0 }
 0x1e6   : > { %331 = vadd.xlane.f32.xlu0 %v330_v63  ;;  %334 = vadd.xlane.f32.xlu1 %v333_v3 }
 0x1e8   : > { %v309_v4 = vpop.permute.xlu1 %308  ;;  %v397_v11 = vpop.permute.xlu0 %396 }
 0x1e9   : > { %v339_v7 = vsel %vm251_vm0, %v309_v4, 0.0  ;;  %v422_v23 = vsel %vm251_vm0, %v397_v11, 0.0 }
 0x1ea   : > { %337 = vadd.xlane.f32.xlu0 %v336_v6  ;;  %340 = vadd.xlane.f32.xlu1 %v339_v7 }
 0x1ec   : > { %v395_v14 = vpop.permute.xlu1 %394  ;;  %v401_v19 = vpop.permute.xlu0 %400 }
 0x1ed   : > { %v419_v18 = vsel %vm251_vm0, %v395_v14, 0.0  ;;  %v428_v30 = vsel %vm251_vm0, %v401_v19, 0.0 }
 0x1ee   : > { %417 = vadd.xlane.f32.xlu0 %v416_v15  ;;  %420 = vadd.xlane.f32.xlu1 %v419_v18 }
 0x1f0   : > { %v399_v22 = vpop.permute.xlu1 %398  ;;  %v405_v32 = vpop.permute.xlu0 %404 }
 0x1f1   : > { %v425_v26 = vsel %vm251_vm0, %v399_v22, 0.0  ;;  %v434_v36 = vsel %vm251_vm0, %v405_v32, 0.0 }
 0x1f2   : > { %423 = vadd.xlane.f32.xlu0 %v422_v23  ;;  %426 = vadd.xlane.f32.xlu1 %v425_v26 }
 0x1f4   : > { %v403_v27 = vpop.permute.xlu1 %402 }
 0x1f5   : > { %v431_v31 = vsel %vm251_vm0, %v403_v27, 0.0 }
 0x1f6   : > { %429 = vadd.xlane.f32.xlu0 %v428_v30  ;;  %432 = vadd.xlane.f32.xlu1 %v431_v31 }
 0x1f8   : > { %v407_v33 = vpop.permute.xlu1 %406 }
 0x1f9   : > { %v437_v37 = vsel %vm251_vm0, %v407_v33, 0.0 }
 0x1fa   : > { %435 = vadd.xlane.f32.xlu0 %v434_v36  ;;  %438 = vadd.xlane.f32.xlu1 %v437_v37 }
 0x263   : > { %v320_v38 = vpop.xlane.xlu0 %319 }
 0x267   : > { %v326_v39 = vpop.xlane.xlu0 %325  ;;  %v323_v41 = vpop.xlane.xlu1 %322 }
 0x26b   : > { %v329_v42 = vpop.xlane.xlu0 %328 }
 0x26f   : > { %v332_v43 = vpop.xlane.xlu0 %331  ;;  %v335_v44 = vpop.xlane.xlu1 %334 }
 0x273   : > { %v338_v45 = vpop.xlane.xlu0 %337  ;;  %v341_v46 = vpop.xlane.xlu1 %340 }
 0x277   : > { %v418_v47 = vpop.xlane.xlu0 %417  ;;  %v421_v50 = vpop.xlane.xlu1 %420 }
 0x278   : > { %v440_v51 = vadd.f32 %v418_v47, %v320_v38  ;;  %v441_v52 = vadd.f32 %v421_v50, %v323_v41 }
 0x27a   : > { %v448_v35 = vsub.f32 0.0, %v440_v51  ;;  %v449_v53 = vsub.f32 0.0, %v441_v52 }
 0x27b   : > { %v424_v48 = vpop.xlane.xlu0 %423  ;;  %v427_v40 = vpop.xlane.xlu1 %426 }
 0x27c   : > { %v456_v60 = vmul.f32 1.442695, %v448_v35  ;;  %v458_v54 = vmul.f32 1.442695, %v449_v53  ;;  %v442_v55 = vadd.f32 %v424_v48, %v326_v39  ;;  %v443_v56 = vadd.f32 %v427_v40, %v329_v42 }
 0x27e   : > { %675 = vpow2.f32 %v456_v60  ;;  %v450_v57 = vsub.f32 0.0, %v442_v55  ;;  %v451_v34 = vsub.f32 0.0, %v443_v56 }
 0x27f   : > { %677 = vpow2.f32 %v458_v54  ;;  %v430_v58 = vpop.xlane.xlu0 %429  ;;  %v433_v10 = vpop.xlane.xlu1 %432 }
 0x280   : > { %v460_v59 = vmul.f32 1.442695, %v450_v57  ;;  %v462_v61 = vmul.f32 1.442695, %v451_v34  ;;  %v444_v49 = vadd.f32 %v430_v58, %v332_v43  ;;  %v445_v62 = vadd.f32 %v433_v10, %v335_v44 }
 0x282   : > { %679 = vpow2.f32 %v460_v59  ;;  %v452_v63 = vsub.f32 0.0, %v444_v49  ;;  %v453_v3 = vsub.f32 0.0, %v445_v62 }
 0x283   : > { %681 = vpow2.f32 %v462_v61  ;;  %v436_v4 = vpop.xlane.xlu0 %435  ;;  %v439_v6 = vpop.xlane.xlu1 %438 }
 0x284   : > { %v464_v7 = vmul.f32 1.442695, %v452_v63  ;;  %v466_v11 = vmul.f32 1.442695, %v453_v3  ;;  %v446_v14 = vadd.f32 %v436_v4, %v338_v45  ;;  %v447_v15 = vadd.f32 %v439_v6, %v341_v46 }
 0x286   : > { %683 = vpow2.f32 %v464_v7  ;;  %v454_v18 = vsub.f32 0.0, %v446_v14  ;;  %v455_v19 = vsub.f32 0.0, %v447_v15 }
 0x287   : > { %685 = vpow2.f32 %v466_v11 }
 0x288   : > { %v468_v22 = vmul.f32 1.442695, %v454_v18  ;;  %v470_v23 = vmul.f32 1.442695, %v455_v19 }
 0x28a   : > { %687 = vpow2.f32 %v468_v22 }
 0x28b   : > { %v676_v26 = vpop.eup %675  ;;  %689 = vpow2.f32 %v470_v23 }
 0x28c   : > { %v678_v27 = vpop.eup %677  ;;  %v472_v30 = vadd.f32 1.0, %v676_v26 }
 0x28d   : > { %v473_v31 = vadd.f32 1.0, %v678_v27 }
 0x28e   : > { %691 = vrcp.f32 %v472_v30 }
 0x28f   : > { %v680_v32 = vpop.eup %679  ;;  %693 = vrcp.f32 %v473_v31 }
 0x290   : > { %v682_v33 = vpop.eup %681  ;;  %v474_v36 = vadd.f32 1.0, %v680_v32 }
 0x291   : > { %v475_v37 = vadd.f32 1.0, %v682_v33 }
 0x292   : > { %695 = vrcp.f32 %v474_v36 }
 0x293   : > { %v684_v38 = vpop.eup %683  ;;  %697 = vrcp.f32 %v475_v37 }
 0x294   : > { %v686_v39 = vpop.eup %685  ;;  %v476_v41 = vadd.f32 1.0, %v684_v38 }
 0x295   : > { %v477_v42 = vadd.f32 1.0, %v686_v39 }
 0x296   : > { %699 = vrcp.f32 %v476_v41 }
 0x297   : > { %v688_v43 = vpop.eup %687  ;;  %701 = vrcp.f32 %v477_v42 }
 0x298   : > { %v690_v44 = vpop.eup %689  ;;  %v478_v45 = vadd.f32 1.0, %v688_v43 }
 0x299   : > { %v479_v46 = vadd.f32 1.0, %v690_v44 }
 0x29a   : > { %703 = vrcp.f32 %v478_v45 }
 0x29b   : > { %v692_v47 = vpop.eup %691  ;;  %705 = vrcp.f32 %v479_v46 }
 0x29c   : > { %v694_v50 = vpop.eup %693  ;;  %v488_v51 = vmul.f32 %v692_v47, %v934_v0  ;;  %v489_v52 = vmul.f32 %v692_v47, %v937_v1 }
 0x29d   : > { %v490_v35 = vmul.f32 %v694_v50, %v940_v2  ;;  %v491_v53 = vmul.f32 %v694_v50, %v947_v5 }
 0x29e   : > { %504 = vst [vmem:[%s1139_s28] sm:$0xff] %v488_v51  ;;  %505 = vst [vmem:[%s1139_s28 + $0x8] sm:$0xff] %v489_v52 }
 0x29f   : > { %v696_v0 = vpop.eup %695  ;;  %506 = vst [vmem:[%s1139_s28 + $0x10] sm:$0xff] %v490_v35  ;;  %507 = vst [vmem:[%s1139_s28 + $0x18] sm:$0xff] %v491_v53 }
 0x2a0   : > { %v698_v1 = vpop.eup %697  ;;  %v492_v2 = vmul.f32 %v696_v0, %v954_v8  ;;  %v493_v5 = vmul.f32 %v696_v0, %v957_v9 }
 0x2a1   : > { %v494_v48 = vmul.f32 %v698_v1, %v964_v12  ;;  %v495_v40 = vmul.f32 %v698_v1, %v967_v13 }
 0x2a2   : > { %508 = vst [vmem:[%s1139_s28 + $0x20] sm:$0xff] %v492_v2  ;;  %509 = vst [vmem:[%s1139_s28 + $0x28] sm:$0xff] %v493_v5 }
 0x2a3   : > { %v700_v60 = vpop.eup %699  ;;  %510 = vst [vmem:[%s1139_s28 + $0x30] sm:$0xff] %v494_v48  ;;  %511 = vst [vmem:[%s1139_s28 + $0x38] sm:$0xff] %v495_v40 }
 0x2a4   : > { %v702_v54 = vpop.eup %701  ;;  %v496_v55 = vmul.f32 %v700_v60, %v974_v16  ;;  %v497_v8 = vmul.f32 %v700_v60, %v977_v17 }
 0x2a5   : > { %v498_v56 = vmul.f32 %v702_v54, %v984_v20  ;;  %v499_v9 = vmul.f32 %v702_v54, %v987_v21 }
 0x2a6   : > { %512 = vst [vmem:[%s1139_s28 + $0x40] sm:$0xff] %v496_v55  ;;  %513 = vst [vmem:[%s1139_s28 + $0x48] sm:$0xff] %v497_v8 }
 0x2a7   : > { %v704_v12 = vpop.eup %703  ;;  %514 = vst [vmem:[%s1139_s28 + $0x50] sm:$0xff] %v498_v56  ;;  %515 = vst [vmem:[%s1139_s28 + $0x58] sm:$0xff] %v499_v9 }
 0x2a8   : > { %v706_v13 = vpop.eup %705  ;;  %v500_v16 = vmul.f32 %v704_v12, %v994_v24  ;;  %v501_v17 = vmul.f32 %v704_v12, %v997_v25 }
 0x2a9   : > { %v502_v20 = vmul.f32 %v706_v13, %v1004_v28  ;;  %v503_v21 = vmul.f32 %v706_v13, %v1007_v29 }
 0x2aa   : > { %516 = vst [vmem:[%s1139_s28 + $0x60] sm:$0xff] %v500_v16  ;;  %517 = vst [vmem:[%s1139_s28 + $0x68] sm:$0xff] %v501_v17 }
 0x2ab   : > { %518 = vst [vmem:[%s1139_s28 + $0x70] sm:$0xff] %v502_v20  ;;  %519 = vst [vmem:[%s1139_s28 + $0x78] sm:$0xff] %v503_v21 }
 0x2ac   : > { %748 = shalt.err (!%p745_p10)
}
 0x2ad   : > { %s749_s19 = scalar_lea.hbm %s1168_s7, 2048  ;;  %s753_s25 = scalar_lea.hbm %s1221_s2, 4096 }
 0x2ae   : > { %p750_p0 = scmp.ne.s32.totalorder %s1168_s7, %s749_s19  ;;  %p754_p1 = scmp.lt.s32.totalorder %s1168_s7, %s1221_s2 }
 0x2af   : > { %p755_p3 = scmp.lt.s32.totalorder %s753_s25, %s749_s19 }
 0x2b0   : > { %p751_p2 = pnand %p750_p0, %p1230_p12 }
 0x2b1   : > { %p756_p6 = por %p755_p3, %p754_p1 }
 0x2b2   : > { %p752_p9 = pneg %p751_p2 }
 0x2b4   : > { %p757_p11 = pnand %p756_p6, %p752_p9 }
 0x2b6   : > { %760 = shalt.err (!%p757_p11)
}
 0x2b7   : > { %s807_s6 = smov 256   ;;  %s808_s20 = smov 16  }
 0x2b8   : > { %625 = dma.vmem_to_hbm [thread:$0]  (%p1230_p12), %s1170_s30, 2048, %s1168_s7, %s521_s13, %s807_s6, %s807_s6, %s808_s20  }
 0x2b9 PF: > { %s549_s28 = sand.u32 1, %s787_s9   ;;  %p1231_p13 = scmp.ne.s32.totalorder %s1227_s22, 0 }
 0x2ba   : > { %p1232_p4 = scmp.ge.s32.totalorder %s799_s12, 2  ;;  %s550_s29 = scalar_lea.sflag [#allocation4], %s549_s28 }
 0x2bc   : > { %p632_p5 = pnand %p1232_p4, %p1231_p13 }
 0x2be   : > { %p633_p7 = pneg %p632_p5 }
 0x2c0   : > { %782 = dma.done.wait (%p633_p7), %s550_s29, 2048  }
 0x2c1   : > { %784 = vsyncadd (%p633_p7), %s550_s29, 4294965248  ;;  %p15_p8 = scmp.ge.s32.totalorder %s849_s15, 4   ;;  %s1233_s9 = smov %s791_s10 }
 0x2c2   : > { %s1234_s10 = smov %s795_s11  ;;  %s1235_s11 = smov %s861_s18 }
 0x2c3   : > { %s1236_s12 = smov %s849_s15  ;;  %17 = sbr.rel (!%p15_p8) target bundleno = 5 (0x5), region = 73 }
 0x2c8   :  { %555 = vsyncpa [#allocation3], 1 }
 0x2c9   :  { %557 = vsyncpa [#allocation3 + $0x1], 1 }
 0x2ca   :  { %558 = vsyncpa [#allocation4], 1 }
 0x2cb   :  { %560 = vsyncpa [#allocation4 + $0x1], 1 }

</bundles_post_ra>
